<compile_context>
chip_gen: v6e
topology: v6e:2x2x1
jax: 0.10.0
libtpu: 0.0.40
codegen_flags: <defaults>
</compile_context>

<pallas_src>
import jax
import jax.numpy as jnp
import numpy as np
from jax.experimental import pallas as pl
from jax.experimental.pallas import tpu as pltpu


def make_mlp_kernel(n_layers: int, negative_slope: float = 0.01):
    """Kernel over refs: (x_T, w0, b0, ..., w_{L-1}, b_{L-1}, out_T).

    x_T tile:   [in_features, TB]       (batch on lanes)
    w_i:        [out_i, in_i]           (PyTorch nn.Linear layout, resident)
    b_i:        [out_i, 1]              (broadcast over batch lanes)
    out_T tile: [out_features, TB]
    """

    def kernel(*refs):
        x_ref = refs[0]
        o_ref = refs[-1]
        params = refs[1:-1]
        h = x_ref[...]                                   # [in, TB]
        for i in range(n_layers):
            w = params[2 * i][...]                       # [out, in]
            b = params[2 * i + 1][...]                   # [out, 1]
            # MXU matmul, f32 accumulation; N (=TB) is the lane-dense dim.
            h = jnp.dot(w, h.astype(w.dtype),
                        preferred_element_type=jnp.float32) + b
            if i < n_layers - 1:
                # leaky_relu (slope=0.01): mul+max, one fewer VALU op than
                # cmp+select.  dropout(p=0) is the identity.
                h = jnp.maximum(h, negative_slope * h)
        o_ref[...] = h.astype(o_ref.dtype)

    return kernel


def custom_dnn_forward(x, weights, biases, *, block_batch=1024,
                       compute_dtype=jnp.float32):
    """Fused forward pass.

    x:          [B, input_size]         (row-major, as the PyTorch module sees it)
    weights[i]: [out_i, in_i]           (PyTorch nn.Linear weight layout)
    biases[i]:  [out_i, 1]
    returns     [B, output_size] float32
    """
    n_layers = len(weights)
    B, in_features = x.shape
    out_features = weights[-1].shape[0]

    # Feature-major layout: batch on the lane dimension.
    xT = x.T.astype(compute_dtype)                       # [in_features, B]

    # Batch tile: big enough to amortize per-step overhead; tiles are tiny
    # ((32+64+8)*4B per row), so VMEM is never the limiter even on v7x.
    TB = block_batch if B >= block_batch else B
    grid = (pl.cdiv(B, TB),)

    args = [xT]
    in_specs = [pl.BlockSpec((in_features, TB), lambda i: (0, i))]
    for w, b in zip(weights, biases):
        args.append(w.astype(compute_dtype))
        args.append(b.astype(jnp.float32))
        # Constant index_map -> weights/biases stay resident in VMEM,
        # no per-grid-step DMA.
        in_specs.append(pl.BlockSpec(w.shape, lambda i: (0, 0)))
        in_specs.append(pl.BlockSpec(b.shape, lambda i: (0, 0)))

    out_spec = pl.BlockSpec((out_features, TB), lambda i: (0, i))

    # Advisory cost hint for XLA's scheduler.
    flops = 2 * B * sum(int(w.shape[0]) * int(w.shape[1]) for w in weights)
    param_bytes = sum(int(np.prod(w.shape)) * 4 for w in weights) \
        + sum(int(np.prod(b.shape)) * 4 for b in biases)
    bytes_accessed = B * (in_features + out_features) * 4 + param_bytes
    cost = pl.CostEstimate(flops=flops, transcendentals=0,
                           bytes_accessed=bytes_accessed)

    out_T = pl.pallas_call(
        make_mlp_kernel(n_layers),
        out_shape=jax.ShapeDtypeStruct((out_features, B), jnp.float32),
        grid=grid,
        in_specs=in_specs,
        out_specs=out_spec,
        compiler_params=pltpu.CompilerParams(
            dimension_semantics=("parallel",)),   # megacore on v7x
        cost_estimate=cost,
    )(*args)

    return out_T.T                                       # [B, out_features]


def build_layer_dims(input_size, initial_nodes, output_size, n_layers, op, factor):
    valid = {'+': lambda x, y: int(x + y), '-': lambda x, y: int(x - y),
             '*': lambda x, y: int(x * y), '/': lambda x, y: x // y,
             '//': lambda x, y: x // y}
    f = valid[op]
    dims = []
    nodes = None
    for i in range(n_layers):
        if i == 0:
            dims.append((input_size, initial_nodes))
            nodes = initial_nodes
        if (i > 0) and (i < n_layers - 1):
            out = f(nodes, factor)
            dims.append((nodes, out))
            nodes = out
        if i == n_layers - 1:
            dims.append((nodes, output_size))
    return dims


def init_params(key, layer_dims):
    """Deterministic init mimicking nn.Linear default: U(-1/sqrt(fan_in), +).

    Weights are produced in PyTorch layout [out, in]; biases as [out, 1].
    """
    weights, biases = [], []
    for (fan_in, fan_out) in layer_dims:
        key, kw, kb = jax.random.split(key, 3)
        bound = 1.0 / np.sqrt(fan_in)
        w = jax.random.uniform(kw, (fan_out, fan_in), jnp.float32, -bound, bound)
        b = jax.random.uniform(kb, (fan_out, 1), jnp.float32, -bound, bound)
        weights.append(w)
        biases.append(b)
    return weights, biases


def reference_forward(x, weights, biases):
    """Pure-JAX reference matching the PyTorch forward."""
    h = x
    for i, (w, b) in enumerate(zip(weights, biases)):
        h = h @ w.T + b.reshape(1, -1)
        if i < len(weights) - 1:
            h = jnp.where(h >= 0, h, 0.01 * h)   # F.leaky_relu; dropout(p=0)=id
    return h


if __name__ == "__main__":
    # Module config (small shapes consistent with the module's constructor).
    input_size, initial_nodes, output_size = 32, 64, 8
    n_layers = 5
    batch = 256           # small, but enough for 2 grid steps at TB=128
    TB = 128              # lane-dense batch tile

    layer_dims = build_layer_dims(input_size, initial_nodes, output_size,
                                  n_layers, '/', 2)  # 32->64->32->16->8->8

    key = jax.random.PRNGKey(0)
    key, kx = jax.random.split(key)
    x = jax.random.normal(kx, (batch, input_size), jnp.float32)
    weights, biases = init_params(key, layer_dims)

    out = custom_dnn_forward(x, weights, biases, block_batch=TB,
                             compute_dtype=jnp.float32)
    out = jax.block_until_ready(out)

    ref = reference_forward(x, weights, biases)
    assert out.shape == (batch, output_size)
    assert np.allclose(np.asarray(out), np.asarray(ref), atol=1e-4, rtol=1e-4)

    # TODO(synk): Custom_DNN.evaluate (softmax over a dataloader) is a training
    # utility outside forward() and is intentionally not implemented here.
    print("KERNEL_OK")
</pallas_src>

<mosaic_0001>
module attributes {stable_mosaic.version = 11 : i64} {
  func.func @kernel(%arg0: i32, %arg1: memref<32x128xf32, #tpu.memory_space<vmem>>, %arg2: memref<64x32xf32, #tpu.memory_space<vmem>>, %arg3: memref<64x1xf32, #tpu.memory_space<vmem>>, %arg4: memref<32x64xf32, #tpu.memory_space<vmem>>, %arg5: memref<32x1xf32, #tpu.memory_space<vmem>>, %arg6: memref<16x32xf32, #tpu.memory_space<vmem>>, %arg7: memref<16x1xf32, #tpu.memory_space<vmem>>, %arg8: memref<8x16xf32, #tpu.memory_space<vmem>>, %arg9: memref<8x1xf32, #tpu.memory_space<vmem>>, %arg10: memref<8x8xf32, #tpu.memory_space<vmem>>, %arg11: memref<8x1xf32, #tpu.memory_space<vmem>>, %arg12: memref<8x128xf32, #tpu.memory_space<vmem>>) attributes {dimension_semantics = [#tpu.dimension_semantics<parallel>], iteration_bounds = array<i64: 2>, scalar_prefetch = 0 : i64, scratch_operands = 0 : i64, tpu.core_type = #tpu.core_type<tc>, window_params = [{transform_indices = @transform_0, window_bounds = array<i64: 32, 128>}, {pipeline_mode = #tpu.pipeline_mode<synchronous>, transform_indices = @transform_1, window_bounds = array<i64: 64, 32>}, {pipeline_mode = #tpu.pipeline_mode<synchronous>, transform_indices = @transform_2, window_bounds = array<i64: 64, 1>}, {pipeline_mode = #tpu.pipeline_mode<synchronous>, transform_indices = @transform_3, window_bounds = array<i64: 32, 64>}, {pipeline_mode = #tpu.pipeline_mode<synchronous>, transform_indices = @transform_4, window_bounds = array<i64: 32, 1>}, {pipeline_mode = #tpu.pipeline_mode<synchronous>, transform_indices = @transform_5, window_bounds = array<i64: 16, 32>}, {pipeline_mode = #tpu.pipeline_mode<synchronous>, transform_indices = @transform_6, window_bounds = array<i64: 16, 1>}, {pipeline_mode = #tpu.pipeline_mode<synchronous>, transform_indices = @transform_7, window_bounds = array<i64: 8, 16>}, {pipeline_mode = #tpu.pipeline_mode<synchronous>, transform_indices = @transform_8, window_bounds = array<i64: 8, 1>}, {pipeline_mode = #tpu.pipeline_mode<synchronous>, transform_indices = @transform_9, window_bounds = array<i64: 8, 8>}, {pipeline_mode = #tpu.pipeline_mode<synchronous>, transform_indices = @transform_10, window_bounds = array<i64: 8, 1>}, {transform_indices = @transform_11, window_bounds = array<i64: 8, 128>}]} {
    %c0 = arith.constant 0 : index
    %c0_0 = arith.constant 0 : index
    %0 = vector.load %arg1[%c0, %c0_0] : memref<32x128xf32, #tpu.memory_space<vmem>>, vector<32x128xf32>
    %c0_1 = arith.constant 0 : index
    %c0_2 = arith.constant 0 : index
    %1 = vector.load %arg2[%c0_1, %c0_2] : memref<64x32xf32, #tpu.memory_space<vmem>>, vector<64x32xf32>
    %c0_3 = arith.constant 0 : index
    %c0_4 = arith.constant 0 : index
    %2 = vector.load %arg3[%c0_3, %c0_4] : memref<64x1xf32, #tpu.memory_space<vmem>>, vector<64x1xf32>
    %cst = arith.constant dense<0.000000e+00> : vector<64x128xf32>
    %3 = tpu.matmul %1, %0, %cst {dimension_numbers = #tpu.dot_dimension_numbers<[1], [0], [0], [1], [0, 0, 1, 1], [], []>} : vector<64x32xf32>, vector<32x128xf32>, vector<64x128xf32> -> vector<64x128xf32>
    %4 = vector.broadcast %2 : vector<64x1xf32> to vector<64x128xf32>
    %5 = arith.addf %3, %4 : vector<64x128xf32>
    %cst_5 = arith.constant 0.00999999977 : f32
    %6 = vector.broadcast %cst_5 : f32 to vector<64x128xf32>
    %7 = arith.mulf %6, %5 : vector<64x128xf32>
    %8 = arith.maximumf %5, %7 : vector<64x128xf32>
    %c0_6 = arith.constant 0 : index
    %c0_7 = arith.constant 0 : index
    %9 = vector.load %arg4[%c0_6, %c0_7] : memref<32x64xf32, #tpu.memory_space<vmem>>, vector<32x64xf32>
    %c0_8 = arith.constant 0 : index
    %c0_9 = arith.constant 0 : index
    %10 = vector.load %arg5[%c0_8, %c0_9] : memref<32x1xf32, #tpu.memory_space<vmem>>, vector<32x1xf32>
    %cst_10 = arith.constant dense<0.000000e+00> : vector<32x128xf32>
    %11 = tpu.matmul %9, %8, %cst_10 {dimension_numbers = #tpu.dot_dimension_numbers<[1], [0], [0], [1], [0, 0, 1, 1], [], []>} : vector<32x64xf32>, vector<64x128xf32>, vector<32x128xf32> -> vector<32x128xf32>
    %12 = vector.broadcast %10 : vector<32x1xf32> to vector<32x128xf32>
    %13 = arith.addf %11, %12 : vector<32x128xf32>
    %cst_11 = arith.constant 0.00999999977 : f32
    %14 = vector.broadcast %cst_11 : f32 to vector<32x128xf32>
    %15 = arith.mulf %14, %13 : vector<32x128xf32>
    %16 = arith.maximumf %13, %15 : vector<32x128xf32>
    %c0_12 = arith.constant 0 : index
    %c0_13 = arith.constant 0 : index
    %17 = vector.load %arg6[%c0_12, %c0_13] : memref<16x32xf32, #tpu.memory_space<vmem>>, vector<16x32xf32>
    %c0_14 = arith.constant 0 : index
    %c0_15 = arith.constant 0 : index
    %18 = vector.load %arg7[%c0_14, %c0_15] : memref<16x1xf32, #tpu.memory_space<vmem>>, vector<16x1xf32>
    %cst_16 = arith.constant dense<0.000000e+00> : vector<16x128xf32>
    %19 = tpu.matmul %17, %16, %cst_16 {dimension_numbers = #tpu.dot_dimension_numbers<[1], [0], [0], [1], [0, 0, 1, 1], [], []>} : vector<16x32xf32>, vector<32x128xf32>, vector<16x128xf32> -> vector<16x128xf32>
    %20 = vector.broadcast %18 : vector<16x1xf32> to vector<16x128xf32>
    %21 = arith.addf %19, %20 : vector<16x128xf32>
    %cst_17 = arith.constant 0.00999999977 : f32
    %22 = vector.broadcast %cst_17 : f32 to vector<16x128xf32>
    %23 = arith.mulf %22, %21 : vector<16x128xf32>
    %24 = arith.maximumf %21, %23 : vector<16x128xf32>
    %c0_18 = arith.constant 0 : index
    %c0_19 = arith.constant 0 : index
    %25 = vector.load %arg8[%c0_18, %c0_19] : memref<8x16xf32, #tpu.memory_space<vmem>>, vector<8x16xf32>
    %c0_20 = arith.constant 0 : index
    %c0_21 = arith.constant 0 : index
    %26 = vector.load %arg9[%c0_20, %c0_21] : memref<8x1xf32, #tpu.memory_space<vmem>>, vector<8x1xf32>
    %cst_22 = arith.constant dense<0.000000e+00> : vector<8x128xf32>
    %27 = tpu.matmul %25, %24, %cst_22 {dimension_numbers = #tpu.dot_dimension_numbers<[1], [0], [0], [1], [0, 0, 1, 1], [], []>} : vector<8x16xf32>, vector<16x128xf32>, vector<8x128xf32> -> vector<8x128xf32>
    %28 = vector.broadcast %26 : vector<8x1xf32> to vector<8x128xf32>
    %29 = arith.addf %27, %28 : vector<8x128xf32>
    %cst_23 = arith.constant 0.00999999977 : f32
    %30 = vector.broadcast %cst_23 : f32 to vector<8x128xf32>
    %31 = arith.mulf %30, %29 : vector<8x128xf32>
    %32 = arith.maximumf %29, %31 : vector<8x128xf32>
    %c0_24 = arith.constant 0 : index
    %c0_25 = arith.constant 0 : index
    %33 = vector.load %arg10[%c0_24, %c0_25] : memref<8x8xf32, #tpu.memory_space<vmem>>, vector<8x8xf32>
    %c0_26 = arith.constant 0 : index
    %c0_27 = arith.constant 0 : index
    %34 = vector.load %arg11[%c0_26, %c0_27] : memref<8x1xf32, #tpu.memory_space<vmem>>, vector<8x1xf32>
    %cst_28 = arith.constant dense<0.000000e+00> : vector<8x128xf32>
    %35 = tpu.matmul %33, %32, %cst_28 {dimension_numbers = #tpu.dot_dimension_numbers<[1], [0], [0], [1], [0, 0, 1, 1], [], []>} : vector<8x8xf32>, vector<8x128xf32>, vector<8x128xf32> -> vector<8x128xf32>
    %36 = vector.broadcast %34 : vector<8x1xf32> to vector<8x128xf32>
    %37 = arith.addf %35, %36 : vector<8x128xf32>
    %c0_29 = arith.constant 0 : index
    %c0_30 = arith.constant 0 : index
    %38 = vector.load %arg12[%c0_29, %c0_30] : memref<8x128xf32, #tpu.memory_space<vmem>>, vector<8x128xf32>
    tpu.vector_store %arg12[%c0_29, %c0_30], %37 {strides = array<i32>} : memref<8x128xf32, #tpu.memory_space<vmem>>, vector<8x128xf32>,
    return
  }
  func.func @transform_0(%arg0: i32) -> (i32, i32) {
    %c0_i32 = arith.constant 0 : i32
    %c0_i32_0 = arith.constant 0 : i32
    return %c0_i32, %arg0 : i32, i32
  }
  func.func @transform_1(%arg0: i32) -> (i32, i32) {
    %c0_i32 = arith.constant 0 : i32
    %c0_i32_0 = arith.constant 0 : i32
    %c0_i32_1 = arith.constant 0 : i32
    return %c0_i32, %c0_i32_0 : i32, i32
  }
  func.func @transform_2(%arg0: i32) -> (i32, i32) {
    %c0_i32 = arith.constant 0 : i32
    %c0_i32_0 = arith.constant 0 : i32
    %c0_i32_1 = arith.constant 0 : i32
    return %c0_i32, %c0_i32_0 : i32, i32
  }
  func.func @transform_3(%arg0: i32) -> (i32, i32) {
    %c0_i32 = arith.constant 0 : i32
    %c0_i32_0 = arith.constant 0 : i32
    %c0_i32_1 = arith.constant 0 : i32
    return %c0_i32, %c0_i32_0 : i32, i32
  }
  func.func @transform_4(%arg0: i32) -> (i32, i32) {
    %c0_i32 = arith.constant 0 : i32
    %c0_i32_0 = arith.constant 0 : i32
    %c0_i32_1 = arith.constant 0 : i32
    return %c0_i32, %c0_i32_0 : i32, i32
  }
  func.func @transform_5(%arg0: i32) -> (i32, i32) {
    %c0_i32 = arith.constant 0 : i32
    %c0_i32_0 = arith.constant 0 : i32
    %c0_i32_1 = arith.constant 0 : i32
    return %c0_i32, %c0_i32_0 : i32, i32
  }
  func.func @transform_6(%arg0: i32) -> (i32, i32) {
    %c0_i32 = arith.constant 0 : i32
    %c0_i32_0 = arith.constant 0 : i32
    %c0_i32_1 = arith.constant 0 : i32
    return %c0_i32, %c0_i32_0 : i32, i32
  }
  func.func @transform_7(%arg0: i32) -> (i32, i32) {
    %c0_i32 = arith.constant 0 : i32
    %c0_i32_0 = arith.constant 0 : i32
    %c0_i32_1 = arith.constant 0 : i32
    return %c0_i32, %c0_i32_0 : i32, i32
  }
  func.func @transform_8(%arg0: i32) -> (i32, i32) {
    %c0_i32 = arith.constant 0 : i32
    %c0_i32_0 = arith.constant 0 : i32
    %c0_i32_1 = arith.constant 0 : i32
    return %c0_i32, %c0_i32_0 : i32, i32
  }
  func.func @transform_9(%arg0: i32) -> (i32, i32) {
    %c0_i32 = arith.constant 0 : i32
    %c0_i32_0 = arith.constant 0 : i32
    %c0_i32_1 = arith.constant 0 : i32
    return %c0_i32, %c0_i32_0 : i32, i32
  }
  func.func @transform_10(%arg0: i32) -> (i32, i32) {
    %c0_i32 = arith.constant 0 : i32
    %c0_i32_0 = arith.constant 0 : i32
    %c0_i32_1 = arith.constant 0 : i32
    return %c0_i32, %c0_i32_0 : i32, i32
  }
  func.func @transform_11(%arg0: i32) -> (i32, i32) {
    %c0_i32 = arith.constant 0 : i32
    %c0_i32_0 = arith.constant 0 : i32
    return %c0_i32, %arg0 : i32, i32
  }
}

</mosaic_0001>

<bundles_post_ra>
// kernel: tpu_custom_call.1
= control target key start
LH: loop header
LB: loop body
LE: loop exit
PB: predicated region body
PF: predicated region fallthrough
CT: control target
= control target key end

     0   :  { %s1626_s0 = inlined_call_operand.vmem [shape: f32[32,256], index: 0, kind: input, shape index: {}]   ;;  %s1627_s1 = inlined_call_operand.vmem [shape: f32[64,32], index: 1, kind: input, shape index: {}]   ;;  %s1628_s2 = inlined_call_operand.vmem [shape: f32[64,1], index: 2, kind: input, shape index: {}]   ;;  %s1629_s3 = inlined_call_operand.vmem [shape: f32[32,64], index: 3, kind: input, shape index: {}]   ;;  %s1630_s4 = inlined_call_operand.vmem [shape: f32[32,1], index: 4, kind: input, shape index: {}]   ;;  %s1631_s5 = inlined_call_operand.vmem [shape: f32[16,32], index: 5, kind: input, shape index: {}]   ;;  %s1632_s6 = inlined_call_operand.vmem [shape: f32[16,1], index: 6, kind: input, shape index: {}]   ;;  %s1633_s7 = inlined_call_operand.vmem [shape: f32[8,16], index: 7, kind: input, shape index: {}]   ;;  %s1634_s8 = inlined_call_operand.vmem [shape: f32[8,1], index: 8, kind: input, shape index: {}]   ;;  %s1635_s9 = inlined_call_operand.vmem [shape: f32[8,8], index: 9, kind: input, shape index: {}]   ;;  %s1636_s10 = inlined_call_operand.vmem [shape: f32[8,1], index: 10, kind: input, shape index: {}]   ;;  %s1637_s11 = inlined_call_operand.hbm [shape: f32[8,256], index: 11, kind: output, shape index: {}]  }
   0x1   :  { %1638 = sst [smem:[#allocation6_spill]] %s1626_s0 }
   0x2   :  { %16 = vsyncpa [#allocation4], 0 }
   0x3   :  { %18 = vsyncpa [#allocation4 + $0x1], 0  ;;  %s1413_s17 = smov 0   ;;  %s1415_s18 = smov 0  }
   0x4   :  { %s1417_s19 = smov 0   ;;  %s1419_s20 = smov 0  }
   0x5 LB: > { %s1114_s21 = sadd.s32 4294967295, %s1347_s20   ;;  %s1115_s22 = sadd.s32 4294967294, %s1347_s20   ;;  %s1347_s20 = sphi %s1419_s20, %s1645_s20   ;;  %s1343_s19 = sphi %s1417_s19, %s1644_s19   ;;  %s1339_s18 = sphi %s1415_s18, %s1643_s18   ;;  %s1335_s17 = sphi %s1413_s17, %s1642_s17  }
   0x6   : > { %s1436_s23 = sadd.s32 1, %s1347_s20   ;;  %s31_s24 = sadd.s32 1, %s1343_s19 }
   0x7   : > { %s28_s25 = ssub.s32 %s1347_s20, %s1436_s23  ;;  %p38_p0 = scmp.ne.s32.totalorder %s1343_s19, %s1339_s18 }
   0x8   : > { %p29_p1 = scmp.eq.s32.totalorder %s28_s25, 0  ;;  %p39_p2 = scmp.eq.s32.totalorder %s1347_s20, 0 }
   0x9   : > { %p278_p3 = scmp.eq.s32.totalorder %s1114_s21, 1  ;;  %p283_p4 = scmp.ne.s32.totalorder %s1339_s18, %s1335_s17 }
   0xa   : > { %s1449_s26 = scalar_select %p29_p1, %s1343_s19, %s31_s24  }
   0xb   : > { %p40_p5 = por %p39_p2, %p38_p0  ;;  %p1451_p6 = por %p278_p3, %p38_p0 }
   0xc   : > { %p284_p7 = scmp.eq.s32.totalorder %s1115_s22, 1  ;;  %p1117_p9 = scmp.ge.s32.totalorder %s1347_s20, 2 }
   0xe   : > { %p1455_p8 = por %p284_p7, %p283_p4  ;;  %330 = sbr.rel (%p1117_p9) target bundleno = 31 (0x1f), region = 56 }
  0x13   : > { %333 = sbr.rel (!%p40_p5) target bundleno = 31 (0x1f), region = 60  ;;  %s335_s29 = sand.u32 (%p40_p5), 1, %s1343_s19  }
  0x14   : > { %s1119_s30 = sshll.u32 (%p40_p5), %s1347_s20, 3  ;;  %s1118_s12 = sshll.u32 (%p40_p5), %s335_s29, 5 }
  0x15   : > { %s1641_s0 = sld [smem:[#allocation6_spill]] (%p40_p5)  ;;  %s337_s16 = scalar_lea.vmem (%p40_p5), [#allocation2], %s1118_s12 }
  0x1b   : > { %s339_s15 = scalar_lea.vmem %s1641_s0, %s1119_s30 }
  0x1c   : > { %v374_v0 = vld [vmem:[%s339_s15] sm:$0xff]  ;;  %v376_v1 = vld [vmem:[%s339_s15 + $0x10] sm:$0xff] }
  0x1d   : > { %v378_v2 = vld [vmem:[%s339_s15 + $0x20] sm:$0xff]  ;;  %375 = vst [vmem:[%s337_s16] sm:$0xff] %v374_v0  ;;  %377 = vst [vmem:[%s337_s16 + $0x8] sm:$0xff] %v376_v1  ;;  %v380_v3 = vld [vmem:[%s339_s15 + $0x30] sm:$0xff] }
  0x1e   : > { %379 = vst [vmem:[%s337_s16 + $0x10] sm:$0xff] %v378_v2  ;;  %381 = vst [vmem:[%s337_s16 + $0x18] sm:$0xff] %v380_v3 }
  0x1f PF: > { %p1120_p10 = scmp.ge.s32.totalorder %s1347_s20, 1  ;;  %p386_p11 = scmp.lt.s32.totalorder %s1347_s20, 3 }
  0x21   : > { %p387_p12 = pnand %p1120_p10, %p386_p11 }
  0x22   : > { %s1470_s22 = sand.u32 (!%p387_p12), 1, %s1339_s18   ;;  %s1140_s12 = sshll.u32 (!%p387_p12), %s1114_s21, 7 }
  0x23   : > { %390 = sbr.rel (%p387_p12) target bundleno = 1099 (0x44b), region = 98  ;;  %s1121_s29 = sshll.u32 (!%p387_p12), %s1470_s22, 5 }
  0x24   : > { %s395_s13 = scalar_lea.vmem (!%p387_p12), [#allocation2], %s1121_s29  ;;  %s1122_s29 = sshll.u32 (!%p387_p12), %s1470_s22, 3 }
  0x25   : > { %s431_s14 = scalar_lea.vmem (!%p387_p12), [#allocation3], %s1122_s29  ;;  %s1589_s25 = scalar_lea.hbm (!%p387_p12), %s1637_s11, %s1140_s12 }
  0x26   : > { %s1050_s15 = sshll.u32 (!%p387_p12), %s431_s14, 4  ;;  %s1037_s30 = scalar_lea.sflag (!%p387_p12), [#allocation4], %s1470_s22  ;;  %s1051_s15 = int_to_ptr.vmem [resolvable:$true] %s1050_s15 }
  0x27   : > { %s1352_s21 = smov (!%p387_p12), [#allocation3]  }
  0x28   : > { %v436_v4 = vld [vmem:[%s1627_s1] sm:$0xff]  ;;  %vm492_vm0 = vcmask 261120   ;;  %v1349_v5 = vmov 0   ;;  %v451_v6 = vld [vmem:[%s1628_s2 + $0x38] sm:$0xff]  ;;  %v434_v8 = vld [vmem:[%s395_s13 + $0x10] sm:$0xff]  ;;  %vm666_vm1 = vcmask 523264  }
  0x29   : > { %1186 = vmatprep.mubr.msk.f32.mxu0 %vm492_vm0, %v436_v4  ;;  %1285 = vset.pattern.permute.xlu0 %v1349_v5  ;;  %v435_v7 = vld [vmem:[%s395_s13 + $0x18] sm:$0xff]  ;;  %v450_v9 = vld [vmem:[%s1628_s2 + $0x30] sm:$0xff]  ;;  %v449_v10 = vld [vmem:[%s1628_s2 + $0x28] sm:$0xff]  ;;  %vm1351_vm2 = vmmov 0   ;;  %vm878_vm3 = vcmask 130048   ;;  %vm961_vm4 = vcmask 64512  }
  0x2a   : > { %1286 = vset.pattern.permute.xlu1 %v1349_v5  ;;  %489 = vperm.xlu0 %1285, %v451_v6   ;;  %v433_v11 = vld [vmem:[%s395_s13 + $0x8] sm:$0xff]  ;;  %v448_v12 = vld [vmem:[%s1628_s2 + $0x20] sm:$0xff]  ;;  %v447_v14 = vld [vmem:[%s1628_s2 + $0x18] sm:$0xff]  ;;  %s1291_s29 = sshll.u32 %s1352_s21, 4  ;;  %s1292_s29 = int_to_ptr.vmem [resolvable:$false] %s1291_s29 }
  0x2b   : > { %1178 = vmatprep.subr.mxu0 %v435_v7  ;;  %479 = vperm.xlu1 %1286, %v449_v10   ;;  %v432_v13 = vld [vmem:[%s395_s13] sm:$0xff]  ;;  %v437_v15 = vld [vmem:[%s1627_s1 + $0x8] sm:$0xff]  ;;  %v438_v16 = vld [vmem:[%s1627_s1 + $0x10] sm:$0xff]  ;;  %s1287_s13 = scalar_lea.vmem %s1051_s15, 128  ;;  %s1293_s0 = scalar_lea.vmem %s1292_s29, 256 }
  0x2c   : > { %1179 = vmatpush3.msra.mxu0 %v435_v7  ;;  %v446_v17 = vld [vmem:[%s1628_s2 + $0x10] sm:$0xff]  ;;  %v445_v18 = vld [vmem:[%s1628_s2 + $0x8] sm:$0xff]  ;;  %v439_v19 = vld [vmem:[%s1627_s1 + $0x18] sm:$0xff]  ;;  %p1288_p13 = scmp.ne.s32.totalorder %s1051_s15, %s1287_s13  ;;  %p1294_p2 = scmp.lt.s32.totalorder %s1051_s15, %s1292_s29 }
  0x2d   : > { %1180 = vmatprep.subr.mxu0 %v434_v8  ;;  %v440_v20 = vld [vmem:[%s1627_s1 + $0x20] sm:$0xff]  ;;  %v645_v22 = vld [vmem:[%s1630_s4 + $0x18] sm:$0xff]  ;;  %v441_v23 = vld [vmem:[%s1627_s1 + $0x28] sm:$0xff]  ;;  %p1295_p3 = scmp.lt.s32.totalorder %s1293_s0, %s1287_s13 }
  0x2e   : > { %1181 = vmatpush3.msra.mxu0 %v434_v8  ;;  %484 = vperm.xlu0 %1285, %v450_v9   ;;  %v444_v21 = vld [vmem:[%s1628_s2] sm:$0xff]  ;;  %v442_v24 = vld [vmem:[%s1627_s1 + $0x30] sm:$0xff]  ;;  %v643_v26 = vld [vmem:[%s1630_s4 + $0x8] sm:$0xff]  ;;  %p1289_p0 = pnand %p1288_p13, %p1451_p6 }
  0x2f   : > { %1182 = vmatprep.subr.mxu0 %v433_v11  ;;  %474 = vperm.xlu1 %1286, %v448_v12   ;;  %v644_v25 = vld [vmem:[%s1630_s4 + $0x10] sm:$0xff]  ;;  %v443_v27 = vld [vmem:[%s1627_s1 + $0x38] sm:$0xff]  ;;  %v642_v28 = vld [vmem:[%s1630_s4] sm:$0xff]  ;;  %p1296_p4 = por %p1295_p3, %p1294_p2 }
  0x30   : > { %1183 = vmatpush3.msra.mxu0 %v433_v11  ;;  %v775_v29 = vld [vmem:[%s1632_s6 + $0x8] sm:$0xff]  ;;  %v774_v30 = vld [vmem:[%s1632_s6] sm:$0xff]  ;;  %v640_v11 = vld [vmem:[%s1629_s3 + $0x10] sm:$0xff]  ;;  %p1290_p1 = pneg %p1289_p0 }
  0x31   : > { %1184 = vmatprep.subr.mxu0 %v432_v13  ;;  %v872_v31 = vld [vmem:[%s1634_s8] sm:$0xff]  ;;  %v639_v10 = vld [vmem:[%s1629_s3 + $0x8] sm:$0xff]  ;;  %v641_v12 = vld [vmem:[%s1629_s3 + $0x18] sm:$0xff] }
  0x32   : > { %1185 = vmatpush3.msra.mxu0 %v432_v13  ;;  %469 = vperm.xlu0 %1285, %v447_v14   ;;  %v955_v32 = vld [vmem:[%s1636_s10] sm:$0xff]  ;;  %p1297_p5 = pnand %p1296_p4, %p1290_p1 }
  0x33   : > { %1187 = vmatmul.mubr.msk.f32.vlgmr.msra.gmra.mxu0 %vm492_vm0, %v437_v15  ;;  %464 = vperm.xlu1 %1286, %v446_v17   ;;  %v638_v33 = vld [vmem:[%s1629_s3] sm:$0xff] }
  0x34   : > { %1189 = vmatprep.mubr.msk.f32.mxu0 %vm492_vm0, %v438_v16  ;;  %1214 = vmatprep.mubr.msk.f32.mxu1 %vm666_vm1, %v638_v33  ;;  %v772_v13 = vld [vmem:[%s1631_s5] sm:$0xff] }
  0x36   : > { %459 = vperm.xlu0 %1285, %v445_v18  }
  0x37   : > { %1190 = vmatmul.mubr.msk.f32.gmra.mxu0 %vm492_vm0, %v439_v19  ;;  %454 = vperm.xlu1 %1286, %v444_v21  }
  0x38   : > { %1192 = vmatprep.mubr.msk.f32.mxu0 %vm492_vm0, %v440_v20 }
  0x3a   : > { %663 = vperm.xlu0 %1285, %v645_v22  }
  0x3b   : > { %1193 = vmatmul.mubr.msk.f32.gmra.mxu0 %vm492_vm0, %v441_v23  ;;  %658 = vperm.xlu1 %1286, %v644_v25  }
  0x3c   : > { %1195 = vmatprep.mubr.msk.f32.mxu0 %vm492_vm0, %v442_v24 }
  0x3e   : > { %653 = vperm.xlu0 %1285, %v643_v26  }
  0x3f   : > { %1196 = vmatmul.mubr.msk.f32.gmra.mxu0 %vm492_vm0, %v443_v27  ;;  %648 = vperm.xlu1 %1286, %v642_v28  }
  0x40   : > { %1228 = vmatprep.mubr.msk.f32.mxu0 %vm492_vm0, %v772_v13 }
  0x42   : > { %783 = vperm.xlu0 %1285, %v775_v29  }
  0x43   : > { %778 = vperm.xlu1 %1286, %v774_v30  }
  0x46   : > { %875 = vperm.xlu0 %1285, %v872_v31  }
  0x47   : > { %958 = vperm.xlu1 %1286, %v955_v32  }
  0xa5   : > { %v490_v35 = vpop.permute.xlu0 %489 }
  0xa6   : > { %v480_v37 = vpop.permute.xlu1 %479 }
  0xa9   : > { %v485_v40 = vpop.permute.xlu0 %484 }
  0xaa   : > { %v475_v42 = vpop.permute.xlu1 %474 }
  0xad   : > { %v470_v47 = vpop.permute.xlu0 %469 }
  0xae   : > { %v465_v52 = vpop.permute.xlu1 %464 }
  0xb1   : > { %v460_v60 = vpop.permute.xlu0 %459 }
  0xb2   : > { %v455_v0 = vpop.permute.xlu1 %454 }
  0xb5   : > { %v664_v14 = vpop.permute.xlu0 %663 }
  0xb6   : > { %v659_v15 = vpop.permute.xlu1 %658 }
  0xb9   : > { %v654_v18 = vpop.permute.xlu0 %653 }
  0xba   : > { %v649_v22 = vpop.permute.xlu1 %648 }
  0xf3   : > { %v1188_v34 = vpop.f32.mrf.mxu0 }
  0xf4   : > { %v589_v61 = vadd.f32 %v1188_v34, %v460_v60  ;;  %v773_v34 = vld [vmem:[%s1631_s5 + $0x8] sm:$0xff] }
  0xf5   : > { %v583_v36 = vpop.f32.mrf.mxu0 }
  0xf6   : > { %v584_v1 = vadd.f32 %v583_v36, %v455_v0  ;;  %v623_v4 = vmul.f32 0.01, %v589_v61  ;;  %v784_v36 = vpop.permute.xlu0 %783 }
  0xf7   : > { %v1191_v38 = vpop.f32.mrf.mxu0 }
  0xf8   : > { %v599_v53 = vadd.f32 %v1191_v38, %v470_v47  ;;  %v622_v6 = vmul.f32 0.01, %v584_v1  ;;  %v631_v8 = vmax.f32 %v589_v61, %v623_v4 }
  0xf9   : > { %v593_v39 = vpop.f32.mrf.mxu0 }
  0xfa   : > { %v594_v57 = vadd.f32 %v593_v39, %v465_v52  ;;  %v625_v62 = vmul.f32 0.01, %v599_v53  ;;  %v630_v9 = vmax.f32 %v584_v1, %v622_v6  ;;  %v779_v39 = vpop.permute.xlu1 %778  ;;  %v876_v47 = vpop.permute.xlu0 %875 }
  0xfb   : > { %v1194_v41 = vpop.f32.mrf.mxu0 }
  0xfc   : > { %v609_v45 = vadd.f32 %v1194_v41, %v480_v37  ;;  %v624_v2 = vmul.f32 0.01, %v594_v57  ;;  %v633_v5 = vmax.f32 %v599_v53, %v625_v62  ;;  %v954_v53 = vld [vmem:[%s1635_s9] sm:$0xff] }
  0xfd   : > { %v603_v43 = vpop.f32.mrf.mxu0 }
  0xfe   : > { %v604_v49 = vadd.f32 %v603_v43, %v475_v42  ;;  %v627_v54 = vmul.f32 0.01, %v609_v45  ;;  %v632_v7 = vmax.f32 %v594_v57, %v624_v2 }
  0xff   : > { %v1197_v44 = vpop.f32.mrf.mxu0 }
 0x100   : > { %v619_v46 = vadd.f32 %v1197_v44, %v490_v35  ;;  %v626_v58 = vmul.f32 0.01, %v604_v49  ;;  %v635_v63 = vmax.f32 %v609_v45, %v627_v54  ;;  %v1350_v35 = vmov 0.0   ;;  %v959_v54 = vpop.permute.xlu1 %958 }
 0x101   : > { %v613_v48 = vpop.f32.mrf.mxu0 }
 0x102   : > { %v629_v50 = vmul.f32 0.01, %v619_v46  ;;  %v614_v51 = vadd.f32 %v613_v48, %v485_v40  ;;  %v634_v3 = vmax.f32 %v604_v49, %v626_v58 }
 0x104   : > { %v628_v55 = vmul.f32 0.01, %v614_v51  ;;  %v637_v56 = vmax.f32 %v619_v46, %v629_v50  ;;  %v871_v46 = vld [vmem:[%s1633_s7] sm:$0xff] }
 0x106   : > { %v636_v59 = vmax.f32 %v614_v51, %v628_v55  ;;  %1198 = vmatprep.subr.mxu1 %v637_v56 }
 0x107   : > { %1199 = vmatpush3.msra.mxu1 %v637_v56 }
 0x108   : > { %1200 = vmatprep.subr.mxu1 %v636_v59 }
 0x109   : > { %1201 = vmatpush3.msra.mxu1 %v636_v59 }
 0x10a   : > { %1202 = vmatprep.subr.mxu1 %v635_v63 }
 0x10b   : > { %1203 = vmatpush3.msra.mxu1 %v635_v63 }
 0x10c   : > { %1204 = vmatprep.subr.mxu1 %v634_v3 }
 0x10d   : > { %1205 = vmatpush3.msra.mxu1 %v634_v3 }
 0x10e   : > { %1206 = vmatprep.subr.mxu1 %v633_v5 }
 0x10f   : > { %1207 = vmatpush3.msra.mxu1 %v633_v5 }
 0x110   : > { %1208 = vmatprep.subr.mxu1 %v632_v7 }
 0x111   : > { %1209 = vmatpush3.msra.mxu1 %v632_v7 }
 0x112   : > { %1210 = vmatprep.subr.mxu1 %v631_v8 }
 0x113   : > { %1211 = vmatpush3.msra.mxu1 %v631_v8 }
 0x114   : > { %1212 = vmatprep.subr.mxu1 %v630_v9 }
 0x115   : > { %1213 = vmatpush3.msra.mxu1 %v630_v9 }
 0x116   : > { %1215 = vmatmul.mubr.msk.f32.vlgmr.msra.gmra.mxu1 %vm666_vm1, %v639_v10  ;;  %1231 = vmatprep.subr.mxu1 %v1350_v35 }
 0x117   : > { %1217 = vmatprep.mubr.msk.f32.mxu1 %vm666_vm1, %v640_v11 }
 0x11a   : > { %1218 = vmatmul.mubr.msk.f32.gmra.mxu1 %vm666_vm1, %v641_v12 }
 0x11b   : > { %1235 = vmatprep.mubr.msk.f32.mxu1 %vm1351_vm2, %v1350_v35 }
 0x1d6   : > { %v1216_v16 = vpop.f32.mrf.mxu1 }
 0x1d7   : > { %v751_v20 = vadd.f32 %v1216_v16, %v654_v18 }
 0x1d8   : > { %v745_v17 = vpop.f32.mrf.mxu1 }
 0x1d9   : > { %v746_v24 = vadd.f32 %v745_v17, %v649_v22  ;;  %v765_v27 = vmul.f32 0.01, %v751_v20 }
 0x1da   : > { %v1219_v19 = vpop.f32.mrf.mxu1 }
 0x1db   : > { %v761_v21 = vadd.f32 %v1219_v19, %v664_v14  ;;  %v764_v30 = vmul.f32 0.01, %v746_v24  ;;  %v769_v32 = vmax.f32 %v751_v20, %v765_v27 }
 0x1dc   : > { %v755_v23 = vpop.f32.mrf.mxu1 }
 0x1dd   : > { %v767_v25 = vmul.f32 0.01, %v761_v21  ;;  %v756_v26 = vadd.f32 %v755_v23, %v659_v15  ;;  %v768_v33 = vmax.f32 %v746_v24, %v764_v30 }
 0x1df   : > { %v771_v28 = vmax.f32 %v761_v21, %v767_v25  ;;  %v766_v29 = vmul.f32 0.01, %v756_v26 }
 0x1e1   : > { %v770_v31 = vmax.f32 %v756_v26, %v766_v29  ;;  %1220 = vmatprep.subr.mxu0 %v771_v28 }
 0x1e2   : > { %1221 = vmatpush3.msra.mxu0 %v771_v28 }
 0x1e3   : > { %1222 = vmatprep.subr.mxu0 %v770_v31 }
 0x1e4   : > { %1223 = vmatpush3.msra.mxu0 %v770_v31 }
 0x1e5   : > { %1224 = vmatprep.subr.mxu0 %v769_v32 }
 0x1e6   : > { %1225 = vmatpush3.msra.mxu0 %v769_v32 }
 0x1e7   : > { %1226 = vmatprep.subr.mxu0 %v768_v33 }
 0x1e8   : > { %1227 = vmatpush3.msra.mxu0 %v768_v33 }
 0x1e9   : > { %1229 = vmatmul.mubr.msk.f32.vlgmr.msra.gmra.mxu0 %vm492_vm0, %v773_v34  ;;  %1238 = vmatprep.subr.mxu0 %v1350_v35 }
 0x1ea   : > { %1240 = vmatprep.mubr.msk.f32.mxu0 %vm1351_vm2, %v1350_v35 }
 0x2a9   : > { %v1230_v37 = vpop.f32.mrf.mxu0 }
 0x2aa   : > { %v864_v38 = vadd.f32 %v1230_v37, %v784_v36 }
 0x2ab   : > { %v858_v40 = vpop.f32.mrf.mxu0 }
 0x2ac   : > { %v868_v41 = vmul.f32 0.01, %v864_v38  ;;  %v859_v42 = vadd.f32 %v858_v40, %v779_v39 }
 0x2ae   : > { %v870_v43 = vmax.f32 %v864_v38, %v868_v41  ;;  %v867_v44 = vmul.f32 0.01, %v859_v42 }
 0x2b0   : > { %v869_v45 = vmax.f32 %v859_v42, %v867_v44  ;;  %1232 = vmatpush3.msra.mxu1 %v870_v43 }
 0x2b1   : > { %1233 = vmatprep.subr.mxu1 %v1350_v35 }
 0x2b2   : > { %1234 = vmatpush3.msra.mxu1 %v869_v45 }
 0x2b3   : > { %1236 = vmatmul.mubr.msk.f32.vlgmr.msra.gmra.mxu1 %vm878_vm3, %v871_v46 }
 0x373   : > { %v948_v48 = vpop.f32.mrf.mxu1 }
 0x374   : > { %v949_v49 = vadd.f32 %v948_v48, %v876_v47 }
 0x375   : > { %v1237_v50 = vpop.f32.mrf.mxu1 }
 0x376   : > { %v952_v51 = vmul.f32 0.01, %v949_v49 }
 0x378   : > { %v953_v52 = vmax.f32 %v949_v49, %v952_v51 }
 0x37a   : > { %1239 = vmatpush3.msra.mxu0 %v953_v52 }
 0x37b   : > { %1241 = vmatmul.mubr.msk.f32.vlgmr.msra.gmra.mxu0 %vm961_vm4, %v954_v53 }
 0x43b   : > { %v1031_v55 = vpop.f32.mrf.mxu0 }
 0x43c   : > { %v1032_v56 = vadd.f32 %v1031_v55, %v959_v54 }
 0x43d   : > { %v1242_v57 = vpop.f32.mrf.mxu0 }
 0x43e   : > { %1035 = vst [vmem:[%s431_s14] sm:$0xff] %v1032_v56 }
 0x43f   : > { %1300 = shalt.err (!%p1297_p5)
}
 0x440   : > { %s1301_s12 = scalar_lea.hbm %s1589_s25, 128  ;;  %s1305_s16 = scalar_lea.hbm %s1637_s11, 256 }
 0x441   : > { %p1302_p7 = scmp.ne.s32.totalorder %s1589_s25, %s1301_s12  ;;  %p1306_p12 = scmp.lt.s32.totalorder %s1589_s25, %s1637_s11 }
 0x442   : > { %p1307_p13 = scmp.lt.s32.totalorder %s1305_s16, %s1301_s12 }
 0x443   : > { %p1303_p10 = pnand %p1302_p7, %p1451_p6 }
 0x444   : > { %p1308_p0 = por %p1307_p13, %p1306_p12 }
 0x445   : > { %p1304_p11 = pneg %p1303_p10 }
 0x447   : > { %p1309_p1 = pnand %p1308_p0, %p1304_p11 }
 0x449   : > { %1312 = shalt.err (!%p1309_p1)
}
 0x44a   : > { %1243 = dma.vmem_to_hbm [thread:$0]  (%p1451_p6), %s1051_s15, 128, %s1589_s25, %s1037_s30  }
 0x44b PF: > { %s1062_s0 = sand.u32 1, %s1335_s17   ;;  %p1246_p2 = pnand %p1117_p9, %p1455_p8 }
 0x44c   : > { %s1063_s13 = scalar_lea.sflag [#allocation4], %s1062_s0 }
 0x44d   : > { %p1247_p3 = pneg %p1246_p2 }
 0x44f   : > { %1330 = dma.done.wait (%p1247_p3), %s1063_s13, 128  }
 0x450   : > { %1332 = vsyncadd (%p1247_p3), %s1063_s13, 4294967168  ;;  %p21_p4 = scmp.ge.s32.totalorder %s1436_s23, 4   ;;  %s1642_s17 = smov %s1339_s18 }
 0x451   : > { %s1643_s18 = smov %s1343_s19  ;;  %s1644_s19 = smov %s1449_s26 }
 0x452   : > { %s1645_s20 = smov %s1436_s23  ;;  %23 = sbr.rel (!%p21_p4) target bundleno = 5 (0x5), region = 142 }
 0x457   :  { %1068 = vsyncpa [#allocation4], 1 }
 0x458   :  { %1070 = vsyncpa [#allocation4 + $0x1], 1 }

</bundles_post_ra>
